<compile_context>
chip_gen: v5e
topology: v5e:2x2
jax: 0.10.0
libtpu: 0.0.40
codegen_flags: <defaults>
</compile_context>

<pallas_src>
import jax
import jax.numpy as jnp
from jax.experimental import pallas as pl
from jax.experimental.pallas import tpu as pltpu

_HIDDEN = 256      # fixed by the module: nn.Linear(input_size, 256)
_LANE = 128
_SUBLANE = 8


def _round_up(x, m):
    return (x + m - 1) // m * m


def _cdiv(a, b):
    return (a + b - 1) // b


def _hw_config():
    """Return (vmem_limit_bytes, max_batch_tile) tuned per TPU generation."""
    try:
        kind = jax.devices()[0].device_kind.lower()
    except Exception:
        kind = ""
    if "v7" in kind:
        # v7x: 64 MiB VMEM / TensorCore -> conservative scoped limit, 256-row tiles.
        return 32 * 1024 * 1024, 256
    # v5e / v6e: 128 MiB VMEM -> bigger tiles amortize per-grid-step overhead.
    return 64 * 1024 * 1024, 512


def mlp_kernel(x_ref, w1_ref, b1_ref, w2_ref, b2_ref, o_ref, h_acc):
    k = pl.program_id(1)

    @pl.when(k == 0)
    def _init():
        h_acc[...] = jnp.zeros_like(h_acc)

    # First (large) GEMM: cast the f32 activation tile to bf16 on the VPU
    # (hidden under the MXU) and accumulate in f32.
    h_acc[...] += jnp.dot(x_ref[...].astype(jnp.bfloat16), w1_ref[...],
                          preferred_element_type=jnp.float32)

    @pl.when(k == pl.num_programs(1) - 1)
    def _finalize():
        # Bias + ReLU in f32 on the VPU.
        h = jnp.maximum(h_acc[...] + b1_ref[...], 0.0)
        # Second (tiny) GEMM: bf16 on the MXU, f32 accumulation, N = 128 lanes.
        out = jnp.dot(h.astype(jnp.bfloat16), w2_ref[...],
                      preferred_element_type=jnp.float32)
        o_ref[...] = (out + b2_ref[...]).astype(o_ref.dtype)


def simple_model_forward(x_nchw, w1, b1, w2, b2):
    """x_nchw: (B, C, H, W) f32.  w1: (D, 256), b1: (256,), w2: (256, n_classes), b2: (n_classes,).
    Weights are stored transposed ((in, out)) so the kernel computes x @ W + b."""
    B = x_nchw.shape[0]
    D, H = w1.shape
    C = w2.shape[1]
    assert H == _HIDDEN

    vmem_limit, max_tb = _hw_config()

    # nn.Flatten semantics (row-major over C, H, W).
    x_flat = x_nchw.reshape(B, D)

    # --- tiling decisions ---------------------------------------------------
    C_pad = _round_up(C, _LANE)                 # lane-dense stores, full MXU N tile
    B_pad = _round_up(max(B, 1), _SUBLANE)
    if B_pad >= 2 * _SUBLANE:
        # >= 2 batch tiles so the "parallel" axis shards across both TCs (v7x).
        TB = min(max_tb, _round_up(_cdiv(B_pad, 2), _SUBLANE))
    else:
        TB = B_pad
    B_pad = _round_up(B_pad, TB)
    n_b = B_pad // TB

    # K (feature) tiling: only when resident w1 + the x tile would blow VMEM.
    D_pad, TK, n_k = D, D, 1
    budget = int(0.75 * vmem_limit)
    fixed = (TB * H * 4                 # f32 hidden accumulator scratch
             + H * C_pad * 2            # resident w2 (bf16, single-buffered)
             + H * 4 + C_pad * 4        # biases
             + 2 * TB * C_pad * 4)      # f32 output block (double-buffered)
    if fixed + 2 * TB * TK * 4 + TK * H * 2 > budget:
        per_col = 2 * TB * 4 + 2 * H * 2        # x (f32, 2 bufs) + w1 (bf16, 2 bufs)
        TK = max(512, (budget - fixed) // per_col // 512 * 512)
        D_pad = _round_up(D, TK)
        n_k = D_pad // TK

    # --- operand prep (no host-side padded bf16 copy of x) -------------------
    x_p = x_flat
    if B_pad != B or D_pad != D:
        x_p = jnp.pad(x_flat, ((0, B_pad - B), (0, D_pad - D)))
    w1_p = w1.astype(jnp.bfloat16)
    if D_pad != D:
        w1_p = jnp.pad(w1_p, ((0, D_pad - D), (0, 0)))
    w2_p = jnp.pad(w2.astype(jnp.bfloat16), ((0, 0), (0, C_pad - C)))
    b1_2d = b1.reshape(1, H).astype(jnp.float32)
    b2_p = jnp.pad(b2.reshape(1, C).astype(jnp.float32), ((0, 0), (0, C_pad - C)))

    resident = {"pipeline_mode": pl.Buffered(1)}   # single-buffer constant-index blocks
    w1_mode = resident if n_k == 1 else {}         # keep double-buffering when K-tiled

    cost = pl.CostEstimate(
        flops=2 * B_pad * D_pad * H + 2 * B_pad * H * C_pad,
        transcendentals=0,
        bytes_accessed=(x_p.size * 4 + w1_p.size * 2 + w2_p.size * 2
                        + b1_2d.size * 4 + b2_p.size * 4 + B_pad * C_pad * 4),
    )

    out = pl.pallas_call(
        mlp_kernel,
        out_shape=jax.ShapeDtypeStruct((B_pad, C_pad), jnp.float32),
        grid=(n_b, n_k),
        in_specs=[
            pl.BlockSpec((TB, TK), lambda i, k: (i, k)),                # x: batch x K tiles (f32)
            pl.BlockSpec((TK, H), lambda i, k: (k, 0), **w1_mode),      # w1
            pl.BlockSpec((1, H), lambda i, k: (0, 0), **resident),      # b1: resident
            pl.BlockSpec((H, C_pad), lambda i, k: (0, 0), **resident),  # w2: resident
            pl.BlockSpec((1, C_pad), lambda i, k: (0, 0), **resident),  # b2: resident
        ],
        out_specs=pl.BlockSpec((TB, C_pad), lambda i, k: (i, 0)),
        scratch_shapes=[pltpu.VMEM((TB, H), jnp.float32)],              # hidden accumulator
        compiler_params=pltpu.CompilerParams(
            dimension_semantics=("parallel", "arbitrary"),
            vmem_limit_bytes=vmem_limit,
        ),
        cost_estimate=cost,
    )(x_p, w1_p, b1_2d, w2_p, b2_p)

    # Strip batch / class padding.
    return out[:B, :C]


def init_params(key, input_size, n_classes, hidden=_HIDDEN):
    """Deterministic init mimicking PyTorch Linear default (uniform +/- 1/sqrt(fan_in))."""
    k1, k2, k3, k4 = jax.random.split(key, 4)
    lim1 = 1.0 / jnp.sqrt(jnp.float32(input_size))
    lim2 = 1.0 / jnp.sqrt(jnp.float32(hidden))
    # stored transposed: (in, out)
    w1 = jax.random.uniform(k1, (input_size, hidden), jnp.float32, -lim1, lim1)
    b1 = jax.random.uniform(k2, (hidden,), jnp.float32, -lim1, lim1)
    w2 = jax.random.uniform(k3, (hidden, n_classes), jnp.float32, -lim2, lim2)
    b2 = jax.random.uniform(k4, (n_classes,), jnp.float32, -lim2, lim2)
    return w1, b1, w2, b2


if __name__ == "__main__":
    key = jax.random.PRNGKey(0)
    kx, kp = jax.random.split(key)

    # Small shapes consistent with the module: image-like NCHW input flattened.
    B, C_in, H_sp, W_sp = 2, 4, 16, 16
    input_size = C_in * H_sp * W_sp          # 1024
    n_classes = 10

    x = jax.random.normal(kx, (B, C_in, H_sp, W_sp), jnp.float32)
    w1, b1, w2, b2 = init_params(kp, input_size, n_classes)

    out = simple_model_forward(x, w1, b1, w2, b2)
    out = jax.block_until_ready(out)

    # Pure-JAX f32 reference (kernel uses bf16 matmul inputs -> loose tolerance).
    x_flat = x.reshape(B, input_size)
    ref = jnp.maximum(x_flat @ w1 + b1, 0.0) @ w2 + b2
    assert out.shape == (B, n_classes)
    assert jnp.allclose(out, ref, atol=3e-2, rtol=3e-2)

    print("KERNEL_OK")
</pallas_src>

<mosaic_0001>
module attributes {stable_mosaic.version = 11 : i64} {
  func.func @mlp_kernel(%arg0: i32, %arg1: i32, %arg2: memref<8x1024xf32, #tpu.memory_space<vmem>>, %arg3: memref<1024x256xbf16, #tpu.memory_space<vmem>>, %arg4: memref<1x256xf32, #tpu.memory_space<vmem>>, %arg5: memref<256x128xbf16, #tpu.memory_space<vmem>>, %arg6: memref<1x128xf32, #tpu.memory_space<vmem>>, %arg7: memref<8x128xf32, #tpu.memory_space<vmem>>, %arg8: memref<8x256xf32, #tpu.memory_space<vmem>>) attributes {dimension_semantics = [#tpu.dimension_semantics<parallel>, #tpu.dimension_semantics<arbitrary>], iteration_bounds = array<i64: 1, 1>, scalar_prefetch = 0 : i64, scratch_operands = 1 : i64, tpu.core_type = #tpu.core_type<tc>, window_params = [{transform_indices = @transform_0, window_bounds = array<i64: 8, 1024>}, {pipeline_mode = #tpu.pipeline_mode<synchronous>, transform_indices = @transform_1, window_bounds = array<i64: 1024, 256>}, {pipeline_mode = #tpu.pipeline_mode<synchronous>, transform_indices = @transform_2, window_bounds = array<i64: 1, 256>}, {pipeline_mode = #tpu.pipeline_mode<synchronous>, transform_indices = @transform_3, window_bounds = array<i64: 256, 128>}, {pipeline_mode = #tpu.pipeline_mode<synchronous>, transform_indices = @transform_4, window_bounds = array<i64: 1, 128>}, {transform_indices = @transform_5, window_bounds = array<i64: 8, 128>}]} {
    %c0_i32 = arith.constant 0 : i32
    %0 = arith.cmpi eq, %arg1, %c0_i32 : i32
    %1 = arith.extui %0 : i1 to i32
    %c0_i32_0 = arith.constant 0 : i32
    %2 = arith.cmpi ne, %1, %c0_i32_0 : i32
    scf.if %2 {
      %cst_10 = arith.constant 0.000000e+00 : f32
      %13 = vector.broadcast %cst_10 : f32 to vector<8x256xf32>
      %c0_11 = arith.constant 0 : index
      %c0_12 = arith.constant 0 : index
      %14 = vector.load %arg8[%c0_11, %c0_12] : memref<8x256xf32, #tpu.memory_space<vmem>>, vector<8x256xf32>
      tpu.vector_store %arg8[%c0_11, %c0_12], %13 {strides = array<i32>} : memref<8x256xf32, #tpu.memory_space<vmem>>, vector<8x256xf32>,
    } else {
    }
    %c0 = arith.constant 0 : index
    %c0_1 = arith.constant 0 : index
    %3 = vector.load %arg8[%c0, %c0_1] : memref<8x256xf32, #tpu.memory_space<vmem>>, vector<8x256xf32>
    %c0_2 = arith.constant 0 : index
    %c0_3 = arith.constant 0 : index
    %4 = vector.load %arg2[%c0_2, %c0_3] : memref<8x1024xf32, #tpu.memory_space<vmem>>, vector<8x1024xf32>
    %5 = arith.truncf %4 : vector<8x1024xf32> to vector<8x1024xbf16>
    %c0_4 = arith.constant 0 : index
    %c0_5 = arith.constant 0 : index
    %6 = vector.load %arg3[%c0_4, %c0_5] : memref<1024x256xbf16, #tpu.memory_space<vmem>>, vector<1024x256xbf16>
    %cst = arith.constant dense<0.000000e+00> : vector<8x256xf32>
    %7 = tpu.matmul %5, %6, %cst {dimension_numbers = #tpu.dot_dimension_numbers<[1], [0], [0], [1], [0, 0, 1, 1], [], []>} : vector<8x1024xbf16>, vector<1024x256xbf16>, vector<8x256xf32> -> vector<8x256xf32>
    %8 = arith.addf %3, %7 : vector<8x256xf32>
    %c0_6 = arith.constant 0 : index
    %c0_7 = arith.constant 0 : index
    %9 = vector.load %arg8[%c0_6, %c0_7] : memref<8x256xf32, #tpu.memory_space<vmem>>, vector<8x256xf32>
    tpu.vector_store %arg8[%c0_6, %c0_7], %8 {strides = array<i32>} : memref<8x256xf32, #tpu.memory_space<vmem>>, vector<8x256xf32>,
    %c0_i32_8 = arith.constant 0 : i32
    %10 = arith.cmpi eq, %arg1, %c0_i32_8 : i32
    %11 = arith.extui %10 : i1 to i32
    %c0_i32_9 = arith.constant 0 : i32
    %12 = arith.cmpi ne, %11, %c0_i32_9 : i32
    scf.if %12 {
      %c0_10 = arith.constant 0 : index
      %c0_11 = arith.constant 0 : index
      %13 = vector.load %arg8[%c0_10, %c0_11] : memref<8x256xf32, #tpu.memory_space<vmem>>, vector<8x256xf32>
      %c0_12 = arith.constant 0 : index
      %c0_13 = arith.constant 0 : index
      %14 = vector.load %arg4[%c0_12, %c0_13] : memref<1x256xf32, #tpu.memory_space<vmem>>, vector<1x256xf32>
      %15 = vector.broadcast %14 : vector<1x256xf32> to vector<8x256xf32>
      %16 = arith.addf %13, %15 : vector<8x256xf32>
      %cst_14 = arith.constant 0.000000e+00 : f32
      %17 = vector.broadcast %cst_14 : f32 to vector<8x256xf32>
      %18 = arith.maximumf %16, %17 : vector<8x256xf32>
      %19 = arith.truncf %18 : vector<8x256xf32> to vector<8x256xbf16>
      %c0_15 = arith.constant 0 : index
      %c0_16 = arith.constant 0 : index
      %20 = vector.load %arg5[%c0_15, %c0_16] : memref<256x128xbf16, #tpu.memory_space<vmem>>, vector<256x128xbf16>
      %cst_17 = arith.constant dense<0.000000e+00> : vector<8x128xf32>
      %21 = tpu.matmul %19, %20, %cst_17 {dimension_numbers = #tpu.dot_dimension_numbers<[1], [0], [0], [1], [0, 0, 1, 1], [], []>} : vector<8x256xbf16>, vector<256x128xbf16>, vector<8x128xf32> -> vector<8x128xf32>
      %c0_18 = arith.constant 0 : index
      %c0_19 = arith.constant 0 : index
      %22 = vector.load %arg6[%c0_18, %c0_19] : memref<1x128xf32, #tpu.memory_space<vmem>>, vector<1x128xf32>
      %23 = vector.broadcast %22 : vector<1x128xf32> to vector<8x128xf32>
      %24 = arith.addf %21, %23 : vector<8x128xf32>
      %c0_20 = arith.constant 0 : index
      %c0_21 = arith.constant 0 : index
      %25 = vector.load %arg7[%c0_20, %c0_21] : memref<8x128xf32, #tpu.memory_space<vmem>>, vector<8x128xf32>
      tpu.vector_store %arg7[%c0_20, %c0_21], %24 {strides = array<i32>} : memref<8x128xf32, #tpu.memory_space<vmem>>, vector<8x128xf32>,
    } else {
    }
    return
  }
  func.func @transform_0(%arg0: i32, %arg1: i32) -> (i32, i32) {
    %c0_i32 = arith.constant 0 : i32
    return %arg0, %arg1 : i32, i32
  }
  func.func @transform_1(%arg0: i32, %arg1: i32) -> (i32, i32) {
    %c0_i32 = arith.constant 0 : i32
    %c0_i32_0 = arith.constant 0 : i32
    return %arg1, %c0_i32 : i32, i32
  }
  func.func @transform_2(%arg0: i32, %arg1: i32) -> (i32, i32) {
    %c0_i32 = arith.constant 0 : i32
    %c0_i32_0 = arith.constant 0 : i32
    %c0_i32_1 = arith.constant 0 : i32
    return %c0_i32, %c0_i32_0 : i32, i32
  }
  func.func @transform_3(%arg0: i32, %arg1: i32) -> (i32, i32) {
    %c0_i32 = arith.constant 0 : i32
    %c0_i32_0 = arith.constant 0 : i32
    %c0_i32_1 = arith.constant 0 : i32
    return %c0_i32, %c0_i32_0 : i32, i32
  }
  func.func @transform_4(%arg0: i32, %arg1: i32) -> (i32, i32) {
    %c0_i32 = arith.constant 0 : i32
    %c0_i32_0 = arith.constant 0 : i32
    %c0_i32_1 = arith.constant 0 : i32
    return %c0_i32, %c0_i32_0 : i32, i32
  }
  func.func @transform_5(%arg0: i32, %arg1: i32) -> (i32, i32) {
    %c0_i32 = arith.constant 0 : i32
    %c0_i32_0 = arith.constant 0 : i32
    return %arg0, %c0_i32 : i32, i32
  }
}

</mosaic_0001>

<bundles_post_ra>
// kernel: tpu_custom_call.1
= control target key start
LH: loop header
LB: loop body
LE: loop exit
PB: predicated region body
PF: predicated region fallthrough
CT: control target
= control target key end

     0   :  { %10 = vsyncpa [#allocation4], 0  ;;  %s2226_s0 = inlined_call_operand.hbm [shape: f32[8,1024], index: 0, kind: input, shape index: {}]   ;;  %s2227_s1 = inlined_call_operand.hbm [shape: bf16[1024,256], index: 1, kind: input, shape index: {}]   ;;  %s2228_s2 = inlined_call_operand.hbm [shape: f32[1,256], index: 2, kind: input, shape index: {}]   ;;  %s2229_s3 = inlined_call_operand.hbm [shape: bf16[256,128], index: 3, kind: input, shape index: {}]   ;;  %s2230_s4 = inlined_call_operand.vmem [shape: f32[1,128], index: 4, kind: input, shape index: {}]   ;;  %s2231_s5 = inlined_call_operand.hbm [shape: f32[8,128], index: 5, kind: output, shape index: {}]  }
   0x1   :  { %11 = vsyncpa [#allocation7], 0 }
   0x2   :  { %12 = vsyncpa [#allocation10], 0  ;;  %s29_s20 = sshll.u32 %s2227_s1, 4  ;;  %s30_s20 = int_to_ptr.hbm [resolvable:$true] %s29_s20 }
   0x3   :  { %13 = vsyncpa [#allocation5], 0  ;;  %s2137_s21 = smov [#allocation6]   ;;  %s19_s25 = sshll.u32 %s2226_s0, 4  ;;  %s20_s25 = int_to_ptr.hbm [resolvable:$true] %s19_s25 }
   0x4   :  { %s31_s22 = sshll.u32 %s2137_s21, 4  ;;  %s2138_s26 = smov 128   ;;  %s32_s22 = int_to_ptr.vmem [resolvable:$true] %s31_s22 }
   0x5   :  { %s2139_s27 = smov 8   ;;  %s2140_s28 = smov [#allocation3]  }
   0x6   :  { %37 = dma.hbm_to_vmem [thread:$0]  %s30_s20, 16384, %s32_s22, [#allocation7], %s2138_s26, %s2138_s26, %s2139_s27  }
   0x7   :  { %s21_s29 = sshll.u32 %s2140_s28, 4  ;;  %s43_s7 = sshll.u32 %s2228_s2, 4  ;;  %s22_s29 = int_to_ptr.vmem [resolvable:$true] %s21_s29  ;;  %s44_s7 = int_to_ptr.hbm [resolvable:$true] %s43_s7 }
   0x8   :  { %24 = dma.hbm_to_vmem [thread:$0]  %s20_s25, 1024, %s22_s29, [#allocation4]  }
   0x9   :  { %s53_s9 = sshll.u32 %s2229_s3, 4  ;;  %s2141_s10 = smov [#allocation8]   ;;  %s54_s9 = int_to_ptr.hbm [resolvable:$true] %s53_s9 }
   0xa   :  { %s45_s11 = sshll.u32 %s2141_s10, 4  ;;  %s2142_s0 = smov [#allocation9]   ;;  %s46_s11 = int_to_ptr.vmem [resolvable:$true] %s45_s11 }
   0xb   :  { %48 = dma.hbm_to_vmem [thread:$0]  %s44_s7, 32, %s46_s11, [#allocation7]  }
   0xc   :  { %s55_s12 = sshll.u32 %s2142_s0, 4  ;;  %s2143_s13 = smov 64   ;;  %s56_s12 = int_to_ptr.vmem [resolvable:$true] %s55_s12 }
   0xd   :  { %s2144_s14 = smov 4  }
   0xe   :  { %61 = dma.hbm_to_vmem [thread:$0]  %s54_s9, 2048, %s56_s12, [#allocation10], %s2143_s13, %s2143_s13, %s2144_s14  }
   0xf   :  { %2129 = dma.done.wait [#allocation4], 1024  }
  0x10   :  { %2130 = vsyncadd [#allocation4], 4294966272 }
  0x11   :  { %2131 = dma.done.wait [#allocation7], 16416  }
  0x12   :  { %2132 = vsyncadd [#allocation7], 4294950880 }
  0x13   :  { %2133 = dma.done.wait [#allocation10], 2048  }
  0x14   :  { %2134 = vsyncadd [#allocation10], 4294965248  ;;  %v1337_v0 = vld [vmem:[#allocation6 + $0x70] sm:$0xf]  ;;  %v1870_v1 = vld [vmem:[#allocation6 + $0x74] sm:$0xf0] }
  0x15   :  { %v1401_v2 = vld [vmem:[#allocation6 + $0xf0] sm:$0xf]  ;;  %v1338_v3 = vor.u32 %v1870_v1, %v1337_v0  ;;  %v1886_v4 = vld [vmem:[#allocation6 + $0xf4] sm:$0xf0]  ;;  %v1329_v11 = vld [vmem:[#allocation6 + $0x60] sm:$0xf] }
  0x16   :  { %v1465_v5 = vld [vmem:[#allocation6 + $0x170] sm:$0xf]  ;;  %v1902_v6 = vld [vmem:[#allocation6 + $0x174] sm:$0xf0]  ;;  %v1402_v7 = vor.u32 %v1886_v4, %v1401_v2  ;;  %v1868_v13 = vld [vmem:[#allocation6 + $0x64] sm:$0xf0] }
  0x17   :  { %v1466_v8 = vor.u32 %v1902_v6, %v1465_v5  ;;  %v1529_v9 = vld [vmem:[#allocation6 + $0x1f0] sm:$0xf]  ;;  %v1918_v10 = vld [vmem:[#allocation6 + $0x1f4] sm:$0xf0]  ;;  %872 = vmatpush.bf16.msra.mxu0 %v1338_v3  ;;  %v1393_v14 = vld [vmem:[#allocation6 + $0xe0] sm:$0xf]  ;;  %v1330_v16 = vor.u32 %v1868_v13, %v1329_v11 }
  0x18   :  { %v1530_v12 = vor.u32 %v1918_v10, %v1529_v9  ;;  %v1884_v15 = vld [vmem:[#allocation6 + $0xe4] sm:$0xf0]  ;;  %885 = vmatpush.bf16.msra.mxu1 %v1402_v7  ;;  %v1457_v18 = vld [vmem:[#allocation6 + $0x160] sm:$0xf]  ;;  %v1321_v23 = vld [vmem:[#allocation6 + $0x50] sm:$0xf] }
  0x19   :  { %898 = vmatpush.bf16.msra.mxu2 %v1466_v8  ;;  %v1394_v17 = vor.u32 %v1884_v15, %v1393_v14  ;;  %v1900_v19 = vld [vmem:[#allocation6 + $0x164] sm:$0xf0]  ;;  %v1521_v20 = vld [vmem:[#allocation6 + $0x1e0] sm:$0xf]  ;;  %v1866_v24 = vld [vmem:[#allocation6 + $0x54] sm:$0xf0] }
  0x1a   :  { %911 = vmatpush.bf16.msra.mxu3 %v1530_v12  ;;  %v1458_v21 = vor.u32 %v1900_v19, %v1457_v18  ;;  %v1916_v22 = vld [vmem:[#allocation6 + $0x1e4] sm:$0xf0]  ;;  %v1385_v26 = vld [vmem:[#allocation6 + $0xd0] sm:$0xf]  ;;  %v1882_v27 = vld [vmem:[#allocation6 + $0xd4] sm:$0xf0]  ;;  %v1322_v29 = vor.u32 %v1866_v24, %v1321_v23 }
  0x1b   :  { %v1522_v25 = vor.u32 %v1916_v22, %v1521_v20  ;;  %v1449_v28 = vld [vmem:[#allocation6 + $0x150] sm:$0xf]  ;;  %873 = vmatpush.bf16.msra.mxu0 %v1330_v16  ;;  %v1898_v30 = vld [vmem:[#allocation6 + $0x154] sm:$0xf0]  ;;  %v1386_v33 = vor.u32 %v1882_v27, %v1385_v26  ;;  %v1313_v35 = vld [vmem:[#allocation6 + $0x40] sm:$0xf] }
  0x1c   :  { %v1513_v31 = vld [vmem:[#allocation6 + $0x1d0] sm:$0xf]  ;;  %v1914_v32 = vld [vmem:[#allocation6 + $0x1d4] sm:$0xf0]  ;;  %886 = vmatpush.bf16.msra.mxu1 %v1394_v17  ;;  %v1450_v34 = vor.u32 %v1898_v30, %v1449_v28  ;;  %v1864_v36 = vld [vmem:[#allocation6 + $0x44] sm:$0xf0] }
  0x1d   :  { %899 = vmatpush.bf16.msra.mxu2 %v1458_v21  ;;  %v1377_v37 = vld [vmem:[#allocation6 + $0xc0] sm:$0xf]  ;;  %v1514_v38 = vor.u32 %v1914_v32, %v1513_v31  ;;  %v1880_v39 = vld [vmem:[#allocation6 + $0xc4] sm:$0xf0]  ;;  %v1314_v44 = vor.u32 %v1864_v36, %v1313_v35  ;;  %v1305_v47 = vld [vmem:[#allocation6 + $0x30] sm:$0xf] }
  0x1e   :  { %912 = vmatpush.bf16.msra.mxu3 %v1522_v25  ;;  %v1441_v40 = vld [vmem:[#allocation6 + $0x140] sm:$0xf]  ;;  %v1896_v41 = vld [vmem:[#allocation6 + $0x144] sm:$0xf0]  ;;  %v1378_v45 = vor.u32 %v1880_v39, %v1377_v37  ;;  %v1862_v48 = vld [vmem:[#allocation6 + $0x34] sm:$0xf0] }
  0x1f   :  { %v1505_v42 = vld [vmem:[#allocation6 + $0x1c0] sm:$0xf]  ;;  %v1912_v43 = vld [vmem:[#allocation6 + $0x1c4] sm:$0xf0]  ;;  %874 = vmatpush.bf16.msra.mxu0 %v1322_v29  ;;  %v1442_v46 = vor.u32 %v1896_v41, %v1441_v40  ;;  %v1369_v49 = vld [vmem:[#allocation6 + $0xb0] sm:$0xf]  ;;  %v1306_v56 = vor.u32 %v1862_v48, %v1305_v47 }
  0x20   :  { %887 = vmatpush.bf16.msra.mxu1 %v1386_v33  ;;  %v1506_v50 = vor.u32 %v1912_v43, %v1505_v42  ;;  %v1878_v51 = vld [vmem:[#allocation6 + $0xb4] sm:$0xf0]  ;;  %v1433_v52 = vld [vmem:[#allocation6 + $0x130] sm:$0xf]  ;;  %v1297_v59 = vld [vmem:[#allocation6 + $0x20] sm:$0xf] }
  0x21   :  { %900 = vmatpush.bf16.msra.mxu2 %v1450_v34  ;;  %v1894_v53 = vld [vmem:[#allocation6 + $0x134] sm:$0xf0]  ;;  %v1497_v54 = vld [vmem:[#allocation6 + $0x1b0] sm:$0xf]  ;;  %v1370_v57 = vor.u32 %v1878_v51, %v1369_v49  ;;  %v1860_v60 = vld [vmem:[#allocation6 + $0x24] sm:$0xf0] }
  0x22   :  { %913 = vmatpush.bf16.msra.mxu3 %v1514_v38  ;;  %v1910_v55 = vld [vmem:[#allocation6 + $0x1b4] sm:$0xf0]  ;;  %v1434_v58 = vor.u32 %v1894_v53, %v1433_v52  ;;  %v1361_v61 = vld [vmem:[#allocation6 + $0xa0] sm:$0xf]  ;;  %v1876_v63 = vld [vmem:[#allocation6 + $0xa4] sm:$0xf0]  ;;  %v1298_v4 = vor.u32 %v1860_v60, %v1297_v59 }
  0x23   :  { %875 = vmatpush.bf16.msra.mxu0 %v1314_v44  ;;  %v1498_v62 = vor.u32 %v1910_v55, %v1497_v54  ;;  %v1425_v0 = vld [vmem:[#allocation6 + $0x120] sm:$0xf]  ;;  %v1892_v1 = vld [vmem:[#allocation6 + $0x124] sm:$0xf0]  ;;  %v1362_v5 = vor.u32 %v1876_v63, %v1361_v61  ;;  %v1289_v7 = vld [vmem:[#allocation6 + $0x10] sm:$0xf] }
  0x24   :  { %888 = vmatpush.bf16.msra.mxu1 %v1378_v45  ;;  %v1489_v2 = vld [vmem:[#allocation6 + $0x1a0] sm:$0xf]  ;;  %v1908_v3 = vld [vmem:[#allocation6 + $0x1a4] sm:$0xf0]  ;;  %v1426_v6 = vor.u32 %v1892_v1, %v1425_v0  ;;  %v1858_v8 = vld [vmem:[#allocation6 + $0x14] sm:$0xf0] }
  0x25   :  { %901 = vmatpush.bf16.msra.mxu2 %v1442_v46  ;;  %v1353_v9 = vld [vmem:[#allocation6 + $0x90] sm:$0xf]  ;;  %v1490_v10 = vor.u32 %v1908_v3, %v1489_v2  ;;  %v1874_v11 = vld [vmem:[#allocation6 + $0x94] sm:$0xf0]  ;;  %v1290_v16 = vor.u32 %v1858_v8, %v1289_v7  ;;  %v1281_v17 = vld [vmem:[#allocation6] sm:$0xf] }
  0x26   :  { %914 = vmatpush.bf16.msra.mxu3 %v1506_v50  ;;  %v1417_v12 = vld [vmem:[#allocation6 + $0x110] sm:$0xf]  ;;  %v1890_v13 = vld [vmem:[#allocation6 + $0x114] sm:$0xf0]  ;;  %v1856_v18 = vld [vmem:[#allocation6 + $0x4] sm:$0xf0]  ;;  %v1354_v19 = vor.u32 %v1874_v11, %v1353_v9 }
  0x27   :  { %876 = vmatpush.bf16.msra.mxu0 %v1306_v56  ;;  %v1481_v14 = vld [vmem:[#allocation6 + $0x190] sm:$0xf]  ;;  %v1906_v15 = vld [vmem:[#allocation6 + $0x194] sm:$0xf0]  ;;  %v1418_v20 = vor.u32 %v1890_v13, %v1417_v12  ;;  %v1345_v21 = vld [vmem:[#allocation6 + $0x80] sm:$0xf]  ;;  %v1282_v31 = vor.u32 %v1856_v18, %v1281_v17 }
  0x28   :  { %889 = vmatpush.bf16.msra.mxu1 %v1370_v57  ;;  %v1872_v22 = vld [vmem:[#allocation6 + $0x84] sm:$0xf0]  ;;  %v1409_v23 = vld [vmem:[#allocation6 + $0x100] sm:$0xf]  ;;  %v1482_v24 = vor.u32 %v1906_v15, %v1481_v14  ;;  %v1593_v28 = vld [vmem:[#allocation6 + $0x270] sm:$0xf] }
  0x29   :  { %902 = vmatpush.bf16.msra.mxu2 %v1434_v58  ;;  %v1888_v25 = vld [vmem:[#allocation6 + $0x104] sm:$0xf0]  ;;  %v1473_v26 = vld [vmem:[#allocation6 + $0x180] sm:$0xf]  ;;  %v1934_v29 = vld [vmem:[#allocation6 + $0x274] sm:$0xf0]  ;;  %v1346_v35 = vor.u32 %v1872_v22, %v1345_v21 }
  0x2a   :  { %915 = vmatpush.bf16.msra.mxu3 %v1498_v62  ;;  %v1904_v27 = vld [vmem:[#allocation6 + $0x184] sm:$0xf0]  ;;  %v1657_v30 = vld [vmem:[#allocation6 + $0x2f0] sm:$0xf]  ;;  %v1950_v32 = vld [vmem:[#allocation6 + $0x2f4] sm:$0xf0]  ;;  %v1410_v36 = vor.u32 %v1888_v25, %v1409_v23  ;;  %v1594_v40 = vor.u32 %v1934_v29, %v1593_v28 }
  0x2b   :  { %877 = vmatpush.bf16.msra.mxu0 %v1298_v4  ;;  %v1721_v33 = vld [vmem:[#allocation6 + $0x370] sm:$0xf]  ;;  %v1966_v34 = vld [vmem:[#allocation6 + $0x374] sm:$0xf0]  ;;  %v1474_v39 = vor.u32 %v1904_v27, %v1473_v26  ;;  %v1658_v41 = vor.u32 %v1950_v32, %v1657_v30  ;;  %v1585_v43 = vld [vmem:[#allocation6 + $0x260] sm:$0xf] }
  0x2c   :  { %890 = vmatpush.bf16.msra.mxu1 %v1362_v5  ;;  %v1785_v37 = vld [vmem:[#allocation6 + $0x3f0] sm:$0xf]  ;;  %v1982_v38 = vld [vmem:[#allocation6 + $0x3f4] sm:$0xf0]  ;;  %v1722_v42 = vor.u32 %v1966_v34, %v1721_v33  ;;  %v1932_v44 = vld [vmem:[#allocation6 + $0x264] sm:$0xf0] }
  0x2d   :  { %903 = vmatpush.bf16.msra.mxu2 %v1426_v6  ;;  %v1649_v45 = vld [vmem:[#allocation6 + $0x2e0] sm:$0xf]  ;;  %v1786_v46 = vor.u32 %v1982_v38, %v1785_v37  ;;  %v1948_v47 = vld [vmem:[#allocation6 + $0x2e4] sm:$0xf0]  ;;  %v90_v52 = vld [vmem:[#allocation3 + $0x10] sm:$0xff]  ;;  %v1586_v53 = vor.u32 %v1932_v44, %v1585_v43  ;;  %s2145_s15 = smov [#allocation11]  }
  0x2e   :  { %916 = vmatpush.bf16.msra.mxu3 %v1490_v10  ;;  %v1713_v48 = vld [vmem:[#allocation6 + $0x360] sm:$0xf]  ;;  %v1964_v49 = vld [vmem:[#allocation6 + $0x364] sm:$0xf0]  ;;  %v1577_v54 = vld [vmem:[#allocation6 + $0x250] sm:$0xf]  ;;  %v2188_v57 = vpack.c.bf16 %v90_v52, %v90_v52  ;;  %v1650_v58 = vor.u32 %v1948_v47, %v1649_v45 }
  0x2f   :  { %878 = vmatpush.bf16.msra.mxu0 %v1290_v16  ;;  %v1777_v50 = vld [vmem:[#allocation6 + $0x3e0] sm:$0xf]  ;;  %v1980_v51 = vld [vmem:[#allocation6 + $0x3e4] sm:$0xf0]  ;;  %v1930_v55 = vld [vmem:[#allocation6 + $0x254] sm:$0xf0]  ;;  %v1714_v59 = vor.u32 %v1964_v49, %v1713_v48 }
  0x30   :  { %891 = vmatpush.bf16.msra.mxu1 %v1354_v19  ;;  %v1641_v56 = vld [vmem:[#allocation6 + $0x2d0] sm:$0xf]  ;;  %v1946_v60 = vld [vmem:[#allocation6 + $0x2d4] sm:$0xf0]  ;;  %v1778_v63 = vor.u32 %v1980_v51, %v1777_v50  ;;  %v88_v0 = vld [vmem:[#allocation3] sm:$0xff]  ;;  %v1578_v8 = vor.u32 %v1930_v55, %v1577_v54  ;;  %s1265_s16 = sshll.u32 %s2145_s15, 4  ;;  %s1266_s16 = int_to_ptr.vmem [resolvable:$true] %s1265_s16 }
  0x31   :  { %904 = vmatpush.bf16.msra.mxu2 %v1418_v20  ;;  %v1705_v61 = vld [vmem:[#allocation6 + $0x350] sm:$0xf]  ;;  %v1962_v62 = vld [vmem:[#allocation6 + $0x354] sm:$0xf0]  ;;  %v89_v2 = vld [vmem:[#allocation3 + $0x8] sm:$0xff]  ;;  %v2191_v5 = vpack.c.bf16 %v88_v0, %v88_v0  ;;  %v1642_v9 = vor.u32 %v1946_v60, %v1641_v56  ;;  %s1267_s19 = sshll.u32 %s2231_s5, 4  ;;  %s1268_s19 = int_to_ptr.hbm [resolvable:$true] %s1267_s19 }
  0x32   :  { %917 = vmatpush.bf16.msra.mxu3 %v1482_v24  ;;  %v91_v1 = vld [vmem:[#allocation3 + $0x18] sm:$0xff]  ;;  %v1769_v3 = vld [vmem:[#allocation6 + $0x3d0] sm:$0xf]  ;;  %v2195_v7 = vpack.c.bf16 %v89_v2, %v89_v2  ;;  %v1706_v10 = vor.u32 %v1962_v62, %v1705_v61  ;;  %v1569_v11 = vld [vmem:[#allocation6 + $0x240] sm:$0xf] }
  0x33   :  { %879 = vmatpush.bf16.msra.mxu0 %v1282_v31  ;;  %v1978_v4 = vld [vmem:[#allocation6 + $0x3d4] sm:$0xf0]  ;;  %v2193_v6 = vpack.c.bf16 %v91_v1, %v91_v1  ;;  %v1928_v12 = vld [vmem:[#allocation6 + $0x244] sm:$0xf0]  ;;  %v1633_v13 = vld [vmem:[#allocation6 + $0x2c0] sm:$0xf] }
  0x34   :  { %892 = vmatpush.bf16.msra.mxu1 %v1346_v35  ;;  %v1770_v14 = vor.u32 %v1978_v4, %v1769_v3  ;;  %v1944_v15 = vld [vmem:[#allocation6 + $0x2c4] sm:$0xf0]  ;;  %v1697_v16 = vld [vmem:[#allocation6 + $0x340] sm:$0xf]  ;;  %v1570_v20 = vor.u32 %v1928_v12, %v1569_v11  ;;  %v1561_v23 = vld [vmem:[#allocation6 + $0x230] sm:$0xf] }
  0x35   :  { %905 = vmatpush.bf16.msra.mxu2 %v1410_v36  ;;  %v1960_v17 = vld [vmem:[#allocation6 + $0x344] sm:$0xf0]  ;;  %v1761_v18 = vld [vmem:[#allocation6 + $0x3c0] sm:$0xf]  ;;  %v1634_v21 = vor.u32 %v1944_v15, %v1633_v13  ;;  %v1926_v24 = vld [vmem:[#allocation6 + $0x234] sm:$0xf0] }
  0x36   :  { %918 = vmatpush.bf16.msra.mxu3 %v1474_v39  ;;  %880 = vmatmul.bf16.vlgmr.msra.gmra.mxu0 %v2191_v5  ;;  %v1976_v19 = vld [vmem:[#allocation6 + $0x3c4] sm:$0xf0]  ;;  %v1698_v22 = vor.u32 %v1960_v17, %v1697_v16  ;;  %v1625_v25 = vld [vmem:[#allocation6 + $0x2b0] sm:$0xf]  ;;  %v1942_v27 = vld [vmem:[#allocation6 + $0x2b4] sm:$0xf0]  ;;  %v1562_v32 = vor.u32 %v1926_v24, %v1561_v23 }
  0x37   :  { %924 = vmatpush.bf16.msrb.mxu0 %v1594_v40  ;;  %893 = vmatmul.bf16.vlgmr.msra.gmra.mxu1 %v2195_v7  ;;  %v1762_v26 = vor.u32 %v1976_v19, %v1761_v18  ;;  %v1689_v28 = vld [vmem:[#allocation6 + $0x330] sm:$0xf]  ;;  %v1958_v29 = vld [vmem:[#allocation6 + $0x334] sm:$0xf0]  ;;  %v1626_v33 = vor.u32 %v1942_v27, %v1625_v25  ;;  %v1553_v35 = vld [vmem:[#allocation6 + $0x220] sm:$0xf] }
  0x38   :  { %937 = vmatpush.bf16.msrb.mxu1 %v1658_v41  ;;  %906 = vmatmul.bf16.vlgmr.msra.gmra.mxu2 %v2188_v57  ;;  %v1753_v30 = vld [vmem:[#allocation6 + $0x3b0] sm:$0xf]  ;;  %v1974_v31 = vld [vmem:[#allocation6 + $0x3b4] sm:$0xf0]  ;;  %v1690_v34 = vor.u32 %v1958_v29, %v1689_v28  ;;  %v1924_v36 = vld [vmem:[#allocation6 + $0x224] sm:$0xf0] }
  0x39   :  { %950 = vmatpush.bf16.msrb.mxu2 %v1722_v42  ;;  %919 = vmatmul.bf16.vlgmr.msra.gmra.mxu3 %v2193_v6  ;;  %v1617_v37 = vld [vmem:[#allocation6 + $0x2a0] sm:$0xf]  ;;  %v1754_v38 = vor.u32 %v1974_v31, %v1753_v30  ;;  %v1940_v39 = vld [vmem:[#allocation6 + $0x2a4] sm:$0xf0]  ;;  %v1554_v44 = vor.u32 %v1924_v36, %v1553_v35  ;;  %v1545_v47 = vld [vmem:[#allocation6 + $0x210] sm:$0xf] }
  0x3a   :  { %963 = vmatpush.bf16.msrb.mxu3 %v1786_v46  ;;  %v1681_v40 = vld [vmem:[#allocation6 + $0x320] sm:$0xf]  ;;  %v1956_v41 = vld [vmem:[#allocation6 + $0x324] sm:$0xf0]  ;;  %v1618_v45 = vor.u32 %v1940_v39, %v1617_v37  ;;  %v1922_v48 = vld [vmem:[#allocation6 + $0x214] sm:$0xf0] }
  0x3b   :  { %925 = vmatpush.bf16.msrb.mxu0 %v1586_v53  ;;  %v1745_v42 = vld [vmem:[#allocation6 + $0x3a0] sm:$0xf]  ;;  %v1972_v43 = vld [vmem:[#allocation6 + $0x3a4] sm:$0xf0]  ;;  %v1682_v46 = vor.u32 %v1956_v41, %v1681_v40  ;;  %v1609_v49 = vld [vmem:[#allocation6 + $0x290] sm:$0xf]  ;;  %v1546_v56 = vor.u32 %v1922_v48, %v1545_v47 }
  0x3c   :  { %938 = vmatpush.bf16.msrb.mxu1 %v1650_v58  ;;  %v1746_v50 = vor.u32 %v1972_v43, %v1745_v42  ;;  %v1938_v51 = vld [vmem:[#allocation6 + $0x294] sm:$0xf0]  ;;  %v1673_v52 = vld [vmem:[#allocation6 + $0x310] sm:$0xf]  ;;  %v1537_v58 = vld [vmem:[#allocation6 + $0x200] sm:$0xf] }
  0x3d   :  { %951 = vmatpush.bf16.msrb.mxu2 %v1714_v59  ;;  %v1954_v53 = vld [vmem:[#allocation6 + $0x314] sm:$0xf0]  ;;  %v1737_v54 = vld [vmem:[#allocation6 + $0x390] sm:$0xf]  ;;  %v1920_v59 = vld [vmem:[#allocation6 + $0x204] sm:$0xf0]  ;;  %v1610_v60 = vor.u32 %v1938_v51, %v1609_v49 }
  0x3e   :  { %964 = vmatpush.bf16.msrb.mxu3 %v1778_v63  ;;  %v1970_v55 = vld [vmem:[#allocation6 + $0x394] sm:$0xf0]  ;;  %v1674_v61 = vor.u32 %v1954_v53, %v1673_v52  ;;  %v1601_v62 = vld [vmem:[#allocation6 + $0x280] sm:$0xf]  ;;  %v1936_v63 = vld [vmem:[#allocation6 + $0x284] sm:$0xf0]  ;;  %v1538_v11 = vor.u32 %v1920_v59, %v1537_v58 }
  0x3f   :  { %926 = vmatpush.bf16.msrb.mxu0 %v1578_v8  ;;  %v1665_v0 = vld [vmem:[#allocation6 + $0x300] sm:$0xf]  ;;  %v1738_v1 = vor.u32 %v1970_v55, %v1737_v54  ;;  %v1952_v2 = vld [vmem:[#allocation6 + $0x304] sm:$0xf0]  ;;  %v1869_v8 = vld [vmem:[#allocation6 + $0x74] sm:$0xf]  ;;  %v1602_v15 = vor.u32 %v1936_v63, %v1601_v62 }
  0x40   :  { %939 = vmatpush.bf16.msrb.mxu1 %v1642_v9  ;;  %v1729_v3 = vld [vmem:[#allocation6 + $0x380] sm:$0xf]  ;;  %v1968_v4 = vld [vmem:[#allocation6 + $0x384] sm:$0xf0]  ;;  %v1339_v9 = vld [vmem:[#allocation6 + $0x78] sm:$0xf0]  ;;  %v1666_v16 = vor.u32 %v1952_v2, %v1665_v0 }
  0x41   :  { %952 = vmatpush.bf16.msrb.mxu2 %v1706_v10  ;;  %v1885_v10 = vld [vmem:[#allocation6 + $0xf4] sm:$0xf]  ;;  %v1403_v12 = vld [vmem:[#allocation6 + $0xf8] sm:$0xf0]  ;;  %v1867_v24 = vld [vmem:[#allocation6 + $0x64] sm:$0xf] }
  0x42   :  { %965 = vmatpush.bf16.msrb.mxu3 %v1770_v14  ;;  %v1901_v13 = vld [vmem:[#allocation6 + $0x174] sm:$0xf]  ;;  %v1467_v14 = vld [vmem:[#allocation6 + $0x178] sm:$0xf0]  ;;  %v1406_v25 = vor.u32 %v1885_v10, %v1403_v12  ;;  %v1331_v27 = vld [vmem:[#allocation6 + $0x68] sm:$0xf0] }
  0x43   :  { %927 = vmatpush.bf16.msrb.mxu0 %v1570_v20  ;;  %v1917_v17 = vld [vmem:[#allocation6 + $0x1f4] sm:$0xf]  ;;  %v1531_v18 = vld [vmem:[#allocation6 + $0x1f8] sm:$0xf0]  ;;  %v1730_v20 = vor.u32 %v1968_v4, %v1729_v3  ;;  %v1883_v28 = vld [vmem:[#allocation6 + $0xe4] sm:$0xf]  ;;  %v1334_v39 = vor.u32 %v1867_v24, %v1331_v27 }
  0x44   :  { %940 = vmatpush.bf16.msrb.mxu1 %v1634_v21  ;;  %v94_v19 = vld [vmem:[#allocation3 + $0x30] sm:$0xff]  ;;  %v1342_v21 = vor.u32 %v1869_v8, %v1339_v9  ;;  %v95_v23 = vld [vmem:[#allocation3 + $0x38] sm:$0xff]  ;;  %v93_v29 = vld [vmem:[#allocation3 + $0x28] sm:$0xff]  ;;  %v1534_v30 = vor.u32 %v1917_v17, %v1531_v18 }
  0x45   :  { %953 = vmatpush.bf16.msrb.mxu2 %v1698_v22  ;;  %v92_v22 = vld [vmem:[#allocation3 + $0x20] sm:$0xff]  ;;  %v2200_v31 = vpack.c.bf16 %v94_v19, %v94_v19  ;;  %v2204_v36 = vpack.c.bf16 %v95_v23, %v95_v23  ;;  %v2206_v40 = vpack.c.bf16 %v93_v29, %v93_v29  ;;  %v1865_v43 = vld [vmem:[#allocation6 + $0x54] sm:$0xf]  ;;  %v1387_v47 = vld [vmem:[#allocation6 + $0xd8] sm:$0xf0] }
  0x46   :  { %966 = vmatpush.bf16.msrb.mxu3 %v1762_v26  ;;  %v1470_v26 = vor.u32 %v1901_v13, %v1467_v14  ;;  %v2202_v35 = vpack.c.bf16 %v92_v22, %v92_v22  ;;  %v1915_v37 = vld [vmem:[#allocation6 + $0x1e4] sm:$0xf]  ;;  %v1897_v48 = vld [vmem:[#allocation6 + $0x154] sm:$0xf]  ;;  %v1451_v49 = vld [vmem:[#allocation6 + $0x158] sm:$0xf0] }
  0x47   :  { %928 = vmatpush.bf16.msrb.mxu0 %v1562_v32  ;;  %v1395_v32 = vld [vmem:[#allocation6 + $0xe8] sm:$0xf0]  ;;  %v1515_v51 = vld [vmem:[#allocation6 + $0x1d8] sm:$0xf0]  ;;  %v1454_v54 = vor.u32 %v1897_v48, %v1451_v49  ;;  %v1863_v55 = vld [vmem:[#allocation6 + $0x44] sm:$0xf] }
  0x48   :  { %941 = vmatpush.bf16.msrb.mxu1 %v1626_v33  ;;  %v1899_v33 = vld [vmem:[#allocation6 + $0x164] sm:$0xf]  ;;  %v1398_v41 = vor.u32 %v1883_v28, %v1395_v32  ;;  %v1443_v62 = vld [vmem:[#allocation6 + $0x148] sm:$0xf0]  ;;  %v1861_v4 = vld [vmem:[#allocation6 + $0x34] sm:$0xf] }
  0x49   :  { %954 = vmatpush.bf16.msrb.mxu2 %v1690_v34  ;;  %v1459_v34 = vld [vmem:[#allocation6 + $0x168] sm:$0xf0]  ;;  %v1879_v58 = vld [vmem:[#allocation6 + $0xc4] sm:$0xf]  ;;  %v1307_v8 = vld [vmem:[#allocation6 + $0x38] sm:$0xf0] }
  0x4a   :  { %967 = vmatpush.bf16.msrb.mxu3 %v1754_v38  ;;  %v1523_v38 = vld [vmem:[#allocation6 + $0x1e8] sm:$0xf0]  ;;  %v1462_v42 = vor.u32 %v1899_v33, %v1459_v34  ;;  %v1911_v63 = vld [vmem:[#allocation6 + $0x1c4] sm:$0xf]  ;;  %v1877_v9 = vld [vmem:[#allocation6 + $0xb4] sm:$0xf] }
  0x4b   :  { %929 = vmatpush.bf16.msrb.mxu0 %v1554_v44  ;;  %v1323_v44 = vld [vmem:[#allocation6 + $0x58] sm:$0xf0]  ;;  %v1507_v0 = vld [vmem:[#allocation6 + $0x1c8] sm:$0xf0]  ;;  %v1893_v12 = vld [vmem:[#allocation6 + $0x134] sm:$0xf] }
  0x4c   :  { %942 = vmatpush.bf16.msrb.mxu1 %v1618_v45  ;;  %v1881_v45 = vld [vmem:[#allocation6 + $0xd4] sm:$0xf]  ;;  %v1326_v52 = vor.u32 %v1865_v43, %v1323_v44  ;;  %v1510_v10 = vor.u32 %v1911_v63, %v1507_v0  ;;  %v1435_v13 = vld [vmem:[#allocation6 + $0x138] sm:$0xf0]  ;;  %v1859_v19 = vld [vmem:[#allocation6 + $0x24] sm:$0xf] }
  0x4d   :  { %955 = vmatpush.bf16.msrb.mxu2 %v1682_v46  ;;  %v1526_v46 = vor.u32 %v1915_v37, %v1523_v38  ;;  %v1390_v53 = vor.u32 %v1881_v45, %v1387_v47  ;;  %v1909_v14 = vld [vmem:[#allocation6 + $0x1b4] sm:$0xf]  ;;  %v1438_v18 = vor.u32 %v1893_v12, %v1435_v13  ;;  %v1363_v23 = vld [vmem:[#allocation6 + $0xa8] sm:$0xf0]  ;;  %v1891_v24 = vld [vmem:[#allocation6 + $0x124] sm:$0xf] }
  0x4e   :  { %968 = vmatpush.bf16.msrb.mxu3 %v1746_v50  ;;  %v1913_v50 = vld [vmem:[#allocation6 + $0x1d4] sm:$0xf]  ;;  %v1491_v27 = vld [vmem:[#allocation6 + $0x1a8] sm:$0xf0]  ;;  %v1291_v33 = vld [vmem:[#allocation6 + $0x18] sm:$0xf0] }
  0x4f   :  { %930 = vmatpush.bf16.msrb.mxu0 %v1546_v56  ;;  %v1315_v56 = vld [vmem:[#allocation6 + $0x48] sm:$0xf0]  ;;  %v1518_v59 = vor.u32 %v1913_v50, %v1515_v51  ;;  %v1857_v32 = vld [vmem:[#allocation6 + $0x14] sm:$0xf]  ;;  %v1355_v38 = vld [vmem:[#allocation6 + $0x98] sm:$0xf0] }
  0x50   :  { %943 = vmatpush.bf16.msrb.mxu1 %v1610_v60  ;;  %v1379_v60 = vld [vmem:[#allocation6 + $0xc8] sm:$0xf0]  ;;  %v1873_v34 = vld [vmem:[#allocation6 + $0x94] sm:$0xf]  ;;  %v1483_v43 = vld [vmem:[#allocation6 + $0x198] sm:$0xf0]  ;;  %v1294_v44 = vor.u32 %v1857_v32, %v1291_v33 }
  0x51   :  { %956 = vmatpush.bf16.msrb.mxu2 %v1674_v61  ;;  %v1895_v61 = vld [vmem:[#allocation6 + $0x144] sm:$0xf]  ;;  %v1382_v2 = vor.u32 %v1879_v58, %v1379_v60  ;;  %v1358_v47 = vor.u32 %v1873_v34, %v1355_v38  ;;  %v1347_v50 = vld [vmem:[#allocation6 + $0x88] sm:$0xf0]  ;;  %v1595_v58 = vld [vmem:[#allocation6 + $0x278] sm:$0xf0] }
  0x52   :  { %969 = vmatpush.bf16.msrb.mxu3 %v1738_v1  ;;  %v1318_v1 = vor.u32 %v1863_v55, %v1315_v56  ;;  %v1446_v3 = vor.u32 %v1895_v61, %v1443_v62  ;;  %v1855_v45 = vld [vmem:[#allocation6 + $0x4] sm:$0xf]  ;;  %v1475_v55 = vld [vmem:[#allocation6 + $0x188] sm:$0xf0]  ;;  %v1933_v56 = vld [vmem:[#allocation6 + $0x274] sm:$0xf] }
  0x53   :  { %931 = vmatpush.bf16.msrb.mxu0 %v1538_v11  ;;  %v1371_v11 = vld [vmem:[#allocation6 + $0xb8] sm:$0xf0]  ;;  %v1871_v49 = vld [vmem:[#allocation6 + $0x84] sm:$0xf]  ;;  %v1965_v62 = vld [vmem:[#allocation6 + $0x374] sm:$0xf] }
  0x54   :  { %944 = vmatpush.bf16.msrb.mxu1 %v1602_v15  ;;  %v1499_v15 = vld [vmem:[#allocation6 + $0x1b8] sm:$0xf0]  ;;  %v1374_v17 = vor.u32 %v1877_v9, %v1371_v11  ;;  %v1887_v51 = vld [vmem:[#allocation6 + $0x104] sm:$0xf]  ;;  %v1350_v0 = vor.u32 %v1871_v49, %v1347_v50  ;;  %v1587_v12 = vld [vmem:[#allocation6 + $0x268] sm:$0xf0] }
  0x55   :  { %957 = vmatpush.bf16.msrb.mxu2 %v1666_v16  ;;  %v1310_v16 = vor.u32 %v1861_v4, %v1307_v8  ;;  %v1502_v22 = vor.u32 %v1909_v14, %v1499_v15  ;;  %v1659_v61 = vld [vmem:[#allocation6 + $0x2f8] sm:$0xf0]  ;;  %v1598_v8 = vor.u32 %v1933_v56, %v1595_v58  ;;  %v1931_v11 = vld [vmem:[#allocation6 + $0x264] sm:$0xf]  ;;  %v1651_v15 = vld [vmem:[#allocation6 + $0x2e8] sm:$0xf0] }
  0x56   :  { %970 = vmatpush.bf16.msrb.mxu3 %v1730_v20  ;;  %932 = vmatmul.bf16.vlgmr.msrb.gmra.mxu0 %v2202_v35  ;;  %v1299_v20 = vld [vmem:[#allocation6 + $0x28] sm:$0xf0]  ;;  %v1723_v63 = vld [vmem:[#allocation6 + $0x378] sm:$0xf0]  ;;  %v1947_v13 = vld [vmem:[#allocation6 + $0x2e4] sm:$0xf] }
  0x57   :  { %976 = vmatpush.bf16.msra.mxu0 %v1342_v21  ;;  %945 = vmatmul.bf16.vlgmr.msrb.gmra.mxu1 %v2206_v40  ;;  %v1875_v21 = vld [vmem:[#allocation6 + $0xa4] sm:$0xf]  ;;  %v1302_v28 = vor.u32 %v1859_v19, %v1299_v20  ;;  %v1779_v19 = vld [vmem:[#allocation6 + $0x3e8] sm:$0xf0]  ;;  %v1590_v20 = vor.u32 %v1931_v11, %v1587_v12  ;;  %v1771_v32 = vld [vmem:[#allocation6 + $0x3d8] sm:$0xf0] }
  0x58   :  { %989 = vmatpush.bf16.msra.mxu1 %v1406_v25  ;;  %958 = vmatmul.bf16.vlgmr.msrb.gmra.mxu2 %v2200_v31  ;;  %v1427_v25 = vld [vmem:[#allocation6 + $0x128] sm:$0xf0]  ;;  %v1366_v29 = vor.u32 %v1875_v21, %v1363_v23  ;;  %v1654_v21 = vor.u32 %v1947_v13, %v1651_v15  ;;  %v1929_v23 = vld [vmem:[#allocation6 + $0x254] sm:$0xf]  ;;  %v1927_v38 = vld [vmem:[#allocation6 + $0x244] sm:$0xf] }
  0x59   :  { %1002 = vmatpush.bf16.msra.mxu2 %v1470_v26  ;;  %971 = vmatmul.bf16.vlgmr.msrb.gmra.mxu3 %v2204_v36  ;;  %v1907_v26 = vld [vmem:[#allocation6 + $0x1a4] sm:$0xf]  ;;  %v1941_v49 = vld [vmem:[#allocation6 + $0x2b4] sm:$0xf]  ;;  %v1547_v12 = vld [vmem:[#allocation6 + $0x218] sm:$0xf0] }
  0x5a   :  { %1015 = vmatpush.bf16.msra.mxu3 %v1534_v30  ;;  %v1430_v30 = vor.u32 %v1891_v24, %v1427_v25  ;;  %v1494_v37 = vor.u32 %v1907_v26, %v1491_v27  ;;  %v1579_v24 = vld [vmem:[#allocation6 + $0x258] sm:$0xf0]  ;;  %v1945_v25 = vld [vmem:[#allocation6 + $0x2d4] sm:$0xf] }
  0x5b   :  { %977 = vmatpush.bf16.msra.mxu0 %v1334_v39  ;;  %v1889_v39 = vld [vmem:[#allocation6 + $0x114] sm:$0xf]  ;;  %v1643_v27 = vld [vmem:[#allocation6 + $0x2d8] sm:$0xf0]  ;;  %v1582_v33 = vor.u32 %v1929_v23, %v1579_v24  ;;  %v1919_v23 = vld [vmem:[#allocation6 + $0x204] sm:$0xf] }
  0x5c   :  { %990 = vmatpush.bf16.msra.mxu1 %v1398_v41  ;;  %v1419_v41 = vld [vmem:[#allocation6 + $0x118] sm:$0xf0]  ;;  %v1646_v34 = vor.u32 %v1945_v25, %v1643_v27  ;;  %v1921_v11 = vld [vmem:[#allocation6 + $0x214] sm:$0xf]  ;;  %v1539_v24 = vld [vmem:[#allocation6 + $0x208] sm:$0xf0] }
  0x5d   :  { %1003 = vmatpush.bf16.msra.mxu2 %v1462_v42  ;;  %v1905_v42 = vld [vmem:[#allocation6 + $0x194] sm:$0xf]  ;;  %v1422_v48 = vor.u32 %v1889_v39, %v1419_v41  ;;  %v1571_v39 = vld [vmem:[#allocation6 + $0x248] sm:$0xf0]  ;;  %v1611_v15 = vld [vmem:[#allocation6 + $0x298] sm:$0xf0] }
  0x5e   :  { %1016 = vmatpush.bf16.msra.mxu3 %v1526_v46  ;;  %v1283_v46 = vld [vmem:[#allocation6 + $0x8] sm:$0xf0]  ;;  %v1937_v13 = vld [vmem:[#allocation6 + $0x294] sm:$0xf]  ;;  %v1935_v25 = vld [vmem:[#allocation6 + $0x284] sm:$0xf] }
  0x5f   :  { %978 = vmatpush.bf16.msra.mxu0 %v1326_v52  ;;  %v1486_v52 = vor.u32 %v1905_v42, %v1483_v43  ;;  %v1286_v60 = vor.u32 %v1855_v45, %v1283_v46  ;;  %v1635_v42 = vld [vmem:[#allocation6 + $0x2c8] sm:$0xf0]  ;;  %v1959_v43 = vld [vmem:[#allocation6 + $0x344] sm:$0xf] }
  0x60   :  { %991 = vmatpush.bf16.msra.mxu1 %v1390_v53  ;;  %v1411_v53 = vld [vmem:[#allocation6 + $0x108] sm:$0xf0]  ;;  %v1975_v45 = vld [vmem:[#allocation6 + $0x3c4] sm:$0xf] }
  0x61   :  { %1004 = vmatpush.bf16.msra.mxu2 %v1454_v54  ;;  %v1903_v54 = vld [vmem:[#allocation6 + $0x184] sm:$0xf]  ;;  %v1603_v27 = vld [vmem:[#allocation6 + $0x288] sm:$0xf0] }
  0x62   :  { %1017 = vmatpush.bf16.msra.mxu3 %v1518_v59  ;;  %v1949_v59 = vld [vmem:[#allocation6 + $0x2f4] sm:$0xf]  ;;  %v1478_v4 = vor.u32 %v1903_v54, %v1475_v55  ;;  %v1755_v55 = vld [vmem:[#allocation6 + $0x3b8] sm:$0xf0] }
  0x63   :  { %979 = vmatpush.bf16.msra.mxu0 %v1318_v1  ;;  %v1414_v1 = vor.u32 %v1887_v51, %v1411_v53  ;;  %v1662_v9 = vor.u32 %v1949_v59, %v1659_v61  ;;  %v1627_v51 = vld [vmem:[#allocation6 + $0x2b8] sm:$0xf0]  ;;  %v1973_v54 = vld [vmem:[#allocation6 + $0x3b4] sm:$0xf]  ;;  %v1555_v61 = vld [vmem:[#allocation6 + $0x228] sm:$0xf0] }
  0x64   :  { %992 = vmatpush.bf16.msra.mxu1 %v1382_v2  ;;  %v1981_v2 = vld [vmem:[#allocation6 + $0x3f4] sm:$0xf]  ;;  %v1691_v53 = vld [vmem:[#allocation6 + $0x338] sm:$0xf0]  ;;  %v1630_v58 = vor.u32 %v1941_v49, %v1627_v51 }
  0x65   :  { %1005 = vmatpush.bf16.msra.mxu2 %v1446_v3  ;;  %v1787_v3 = vld [vmem:[#allocation6 + $0x3f8] sm:$0xf0] }
  0x66   :  { %1018 = vmatpush.bf16.msra.mxu3 %v1510_v10  ;;  %v1726_v10 = vor.u32 %v1965_v62, %v1723_v63  ;;  %v1790_v14 = vor.u32 %v1981_v2, %v1787_v3  ;;  %v1939_v62 = vld [vmem:[#allocation6 + $0x2a4] sm:$0xf]  ;;  %v1758_v63 = vor.u32 %v1973_v54, %v1755_v55  ;;  %v1683_v2 = vld [vmem:[#allocation6 + $0x328] sm:$0xf0]  ;;  %v1089_v55 = vld [vmem:[#allocation8] sm:$0x3] }
  0x67   :  { %980 = vmatpush.bf16.msra.mxu0 %v1310_v16  ;;  %v1963_v16 = vld [vmem:[#allocation6 + $0x364] sm:$0xf] }
  0x68   :  { %993 = vmatpush.bf16.msra.mxu1 %v1374_v17  ;;  %v1715_v17 = vld [vmem:[#allocation6 + $0x368] sm:$0xf0]  ;;  %v1971_v3 = vld [vmem:[#allocation6 + $0x3a4] sm:$0xf] }
  0x69   :  { %1006 = vmatpush.bf16.msra.mxu2 %v1438_v18  ;;  %v1979_v18 = vld [vmem:[#allocation6 + $0x3e4] sm:$0xf] }
  0x6a   :  { %1019 = vmatpush.bf16.msra.mxu3 %v1502_v22  ;;  %v1718_v22 = vor.u32 %v1963_v16, %v1715_v17  ;;  %v1782_v26 = vor.u32 %v1979_v18, %v1779_v19  ;;  %v1953_v16 = vld [vmem:[#allocation6 + $0x314] sm:$0xf]  ;;  %v1675_v17 = vld [vmem:[#allocation6 + $0x318] sm:$0xf0] }
  0x6b   :  { %981 = vmatpush.bf16.msra.mxu0 %v1302_v28  ;;  %v1961_v28 = vld [vmem:[#allocation6 + $0x354] sm:$0xf]  ;;  %v1739_v19 = vld [vmem:[#allocation6 + $0x398] sm:$0xf0] }
  0x6c   :  { %994 = vmatpush.bf16.msra.mxu1 %v1366_v29  ;;  %v1707_v29 = vld [vmem:[#allocation6 + $0x358] sm:$0xf0]  ;;  %v1969_v18 = vld [vmem:[#allocation6 + $0x394] sm:$0xf] }
  0x6d   :  { %1007 = vmatpush.bf16.msra.mxu2 %v1430_v30  ;;  %v1977_v30 = vld [vmem:[#allocation6 + $0x3d4] sm:$0xf] }
  0x6e   :  { %1020 = vmatpush.bf16.msra.mxu3 %v1494_v37  ;;  %v1710_v37 = vor.u32 %v1961_v28, %v1707_v29  ;;  %v1774_v41 = vor.u32 %v1977_v30, %v1771_v32  ;;  %v1951_v28 = vld [vmem:[#allocation6 + $0x304] sm:$0xf]  ;;  %v1667_v29 = vld [vmem:[#allocation6 + $0x308] sm:$0xf0] }
  0x6f   :  { %982 = vmatpush.bf16.msra.mxu0 %v1294_v44  ;;  %v1699_v44 = vld [vmem:[#allocation6 + $0x348] sm:$0xf0]  ;;  %v1967_v30 = vld [vmem:[#allocation6 + $0x384] sm:$0xf] }
  0x70   :  { %995 = vmatpush.bf16.msra.mxu1 %v1358_v47  ;;  %v1925_v47 = vld [vmem:[#allocation6 + $0x234] sm:$0xf]  ;;  %v1731_v32 = vld [vmem:[#allocation6 + $0x388] sm:$0xf0] }
  0x71   :  { %1008 = vmatpush.bf16.msra.mxu2 %v1422_v48  ;;  %v1563_v48 = vld [vmem:[#allocation6 + $0x238] sm:$0xf0] }
  0x72   :  { %1021 = vmatpush.bf16.msra.mxu3 %v1486_v52  ;;  %v1957_v52 = vld [vmem:[#allocation6 + $0x334] sm:$0xf]  ;;  %v1566_v56 = vor.u32 %v1925_v47, %v1563_v48 }
  0x73   :  { %983 = vmatpush.bf16.msra.mxu0 %v1286_v60  ;;  %v1694_v59 = vor.u32 %v1957_v52, %v1691_v53  ;;  %v1923_v60 = vld [vmem:[#allocation6 + $0x224] sm:$0xf] }
  0x74   :  { %996 = vmatpush.bf16.msra.mxu1 %v1350_v0  ;;  %v1619_v0 = vld [vmem:[#allocation6 + $0x2a8] sm:$0xf0] }
  0x75   :  { %1009 = vmatpush.bf16.msra.mxu2 %v1414_v1  ;;  %v1955_v1 = vld [vmem:[#allocation6 + $0x324] sm:$0xf] }
  0x76   :  { %1022 = vmatpush.bf16.msra.mxu3 %v1478_v4  ;;  %984 = vmatmul.bf16.vlgmr.msra.gmra.mxu0 %v2191_v5  ;;  %v1763_v5 = vld [vmem:[#allocation6 + $0x3c8] sm:$0xf0] }
  0x77   :  { %1028 = vmatpush.bf16.msrb.mxu0 %v1598_v8  ;;  %997 = vmatmul.bf16.vlgmr.msra.gmra.mxu1 %v2195_v7  ;;  %v1702_v7 = vor.u32 %v1959_v43, %v1699_v44  ;;  %v1766_v50 = vor.u32 %v1975_v45, %v1763_v5  ;;  %v1747_v4 = vld [vmem:[#allocation6 + $0x3a8] sm:$0xf0]  ;;  %v1558_v8 = vor.u32 %v1923_v60, %v1555_v61  ;;  %v1986_v43 = vld [vmem:[#allocation9 + $0x18] sm:$0xff]  ;;  %v1985_v5 = vld [vmem:[#allocation9 + $0x10] sm:$0xff]  ;;  %v1091_v60 = vperm.slane %v1089_v55, 0 }
  0x78   :  { %1041 = vmatpush.bf16.msrb.mxu1 %v1662_v9  ;;  %1010 = vmatmul.bf16.vlgmr.msra.gmra.mxu2 %v2188_v57  ;;  %v1943_v57 = vld [vmem:[#allocation6 + $0x2c4] sm:$0xf]  ;;  %v1622_v9 = vor.u32 %v1939_v62, %v1619_v0  ;;  %v1998_v61 = vld [vmem:[#allocation9 + $0x78] sm:$0xff] }
  0x79   :  { %1054 = vmatpush.bf16.msrb.mxu2 %v1726_v10  ;;  %1023 = vmatmul.bf16.vlgmr.msra.gmra.mxu3 %v2193_v6  ;;  %v1574_v6 = vor.u32 %v1927_v38, %v1571_v39  ;;  %v1638_v46 = vor.u32 %v1943_v57, %v1635_v42  ;;  %v1686_v10 = vor.u32 %v1955_v1, %v1683_v2  ;;  %v1990_v39 = vld [vmem:[#allocation9 + $0x38] sm:$0xff]  ;;  %v1989_v57 = vld [vmem:[#allocation9 + $0x30] sm:$0xff]  ;;  %v1987_v42 = vld [vmem:[#allocation9 + $0x20] sm:$0xff] }
  0x7a   :  { %1067 = vmatpush.bf16.msrb.mxu3 %v1790_v14  ;;  %v1750_v14 = vor.u32 %v1971_v3, %v1747_v4  ;;  %v1734_v38 = vor.u32 %v1967_v30, %v1731_v32  ;;  %v1997_v2 = vld [vmem:[#allocation9 + $0x70] sm:$0xff] }
  0x7b   :  { %1029 = vmatpush.bf16.msrb.mxu0 %v1590_v20  ;;  %v1550_v20 = vor.u32 %v1921_v11, %v1547_v12  ;;  %v1995_v11 = vld [vmem:[#allocation9 + $0x60] sm:$0xff]  ;;  %v1994_v12 = vld [vmem:[#allocation9 + $0x58] sm:$0xff] }
  0x7c   :  { %1042 = vmatpush.bf16.msrb.mxu1 %v1654_v21  ;;  %v1614_v21 = vor.u32 %v1937_v13, %v1611_v15  ;;  %v1993_v15 = vld [vmem:[#allocation9 + $0x50] sm:$0xff] }
  0x7d   :  { %1055 = vmatpush.bf16.msrb.mxu2 %v1718_v22  ;;  %v1678_v22 = vor.u32 %v1953_v16, %v1675_v17 }
  0x7e   :  { %1068 = vmatpush.bf16.msrb.mxu3 %v1782_v26  ;;  %v1742_v26 = vor.u32 %v1969_v18, %v1739_v19  ;;  %v1992_v18 = vld [vmem:[#allocation9 + $0x48] sm:$0xff] }
  0x7f   :  { %1030 = vmatpush.bf16.msrb.mxu0 %v1582_v33  ;;  %v1542_v33 = vor.u32 %v1919_v23, %v1539_v24 }
  0x80   :  { %1043 = vmatpush.bf16.msrb.mxu1 %v1646_v34  ;;  %v1606_v34 = vor.u32 %v1935_v25, %v1603_v27 }
  0x81   :  { %1056 = vmatpush.bf16.msrb.mxu2 %v1710_v37  ;;  %v1670_v37 = vor.u32 %v1951_v28, %v1667_v29 }
  0x82   :  { %1069 = vmatpush.bf16.msrb.mxu3 %v1774_v41  ;;  %v1988_v41 = vld [vmem:[#allocation9 + $0x28] sm:$0xff] }
  0x83   :  { %1031 = vmatpush.bf16.msrb.mxu0 %v1574_v6 }
  0x84   :  { %1044 = vmatpush.bf16.msrb.mxu1 %v1638_v46  ;;  %v1983_v46 = vld [vmem:[#allocation9] sm:$0xff] }
  0x85   :  { %1057 = vmatpush.bf16.msrb.mxu2 %v1702_v7 }
  0x86   :  { %1070 = vmatpush.bf16.msrb.mxu3 %v1766_v50 }
  0x87   :  { %1032 = vmatpush.bf16.msrb.mxu0 %v1566_v56 }
  0x88   :  { %1045 = vmatpush.bf16.msrb.mxu1 %v1630_v58 }
  0x89   :  { %1058 = vmatpush.bf16.msrb.mxu2 %v1694_v59 }
  0x8a   :  { %1071 = vmatpush.bf16.msrb.mxu3 %v1758_v63 }
  0x8b   :  { %1033 = vmatpush.bf16.msrb.mxu0 %v1558_v8  ;;  %v1996_v8 = vld [vmem:[#allocation9 + $0x68] sm:$0xff] }
  0x8c   :  { %1046 = vmatpush.bf16.msrb.mxu1 %v1622_v9 }
  0x8d   :  { %1059 = vmatpush.bf16.msrb.mxu2 %v1686_v10 }
  0x8e   :  { %1072 = vmatpush.bf16.msrb.mxu3 %v1750_v14 }
  0x8f   :  { %1034 = vmatpush.bf16.msrb.mxu0 %v1550_v20 }
  0x90   :  { %1047 = vmatpush.bf16.msrb.mxu1 %v1614_v21  ;;  %v1991_v21 = vld [vmem:[#allocation9 + $0x40] sm:$0xff] }
  0x91   :  { %1060 = vmatpush.bf16.msrb.mxu2 %v1678_v22 }
  0x92   :  { %1073 = vmatpush.bf16.msrb.mxu3 %v1742_v26 }
  0x93   :  { %1035 = vmatpush.bf16.msrb.mxu0 %v1542_v33 }
  0x94   :  { %1048 = vmatpush.bf16.msrb.mxu1 %v1606_v34 }
  0x95   :  { %1061 = vmatpush.bf16.msrb.mxu2 %v1670_v37  ;;  %v1092_v37 = vperm.slane %v1089_v55, 1 }
  0x96   :  { %1074 = vmatpush.bf16.msrb.mxu3 %v1734_v38  ;;  %1036 = vmatmul.bf16.vlgmr.msrb.gmra.mxu0 %v2202_v35 }
  0x97   :  { %1049 = vmatmul.bf16.vlgmr.msrb.gmra.mxu1 %v2206_v40  ;;  %1233 = vmatpush.bf16.msra.mxu0 %v1990_v39  ;;  %v1984_v40 = vld [vmem:[#allocation9 + $0x8] sm:$0xff] }
  0x98   :  { %1062 = vmatmul.bf16.vlgmr.msrb.gmra.mxu2 %v2200_v31  ;;  %1246 = vmatpush.bf16.msra.mxu1 %v1998_v61 }
  0x99   :  { %1075 = vmatmul.bf16.vlgmr.msrb.gmra.mxu3 %v2204_v36 }
  0x9b   :  { %1234 = vmatpush.bf16.msra.mxu0 %v1989_v57 }
  0x9c   :  { %1247 = vmatpush.bf16.msra.mxu1 %v1997_v2 }
  0x9f   :  { %1235 = vmatpush.bf16.msra.mxu0 %v1988_v41 }
  0xa0   :  { %1248 = vmatpush.bf16.msra.mxu1 %v1996_v8 }
  0xa3   :  { %1236 = vmatpush.bf16.msra.mxu0 %v1987_v42 }
  0xa4   :  { %1249 = vmatpush.bf16.msra.mxu1 %v1995_v11 }
  0xa7   :  { %1237 = vmatpush.bf16.msra.mxu0 %v1986_v43 }
  0xa8   :  { %1250 = vmatpush.bf16.msra.mxu1 %v1994_v12 }
  0xab   :  { %1238 = vmatpush.bf16.msra.mxu0 %v1985_v5 }
  0xac   :  { %1251 = vmatpush.bf16.msra.mxu1 %v1993_v15 }
  0xaf   :  { %1239 = vmatpush.bf16.msra.mxu0 %v1984_v40  ;;  %v2008_v40 = vld [vmem:[%s2230_s4] ss:$0 sm:$0xff] }
  0xb0   :  { %1252 = vmatpush.bf16.msra.mxu1 %v1992_v18 }
  0xb3   :  { %v881_v44 = vpop.f32.mrf.mxu0  ;;  %1240 = vmatpush.bf16.msra.mxu0 %v1983_v46 }
  0xb4   :  { %v894_v45 = vpop.f32.mrf.mxu1  ;;  %1253 = vmatpush.bf16.msra.mxu1 %v1991_v21 }
  0xb5   :  { %v895_v48 = vadd.f32 %v894_v45, %v881_v44 }
  0xbb   :  { %v907_v35 = vpop.f32.mrf.mxu2  ;;  %v883_v31 = vpop.f32.mrf.mxu0 }
  0xbc   :  { %v920_v6 = vpop.f32.mrf.mxu3  ;;  %v896_v36 = vpop.f32.mrf.mxu1  ;;  %v908_v49 = vadd.f32 %v907_v35, %v895_v48 }
  0xbe   :  { %v921_v50 = vadd.f32 %v920_v6, %v908_v49 }
  0xc3   :  { %v909_v7 = vpop.f32.mrf.mxu2 }
  0xc4   :  { %v922_v47 = vpop.f32.mrf.mxu3 }
  0xd3   :  { %v933_v51 = vpop.f32.mrf.mxu0 }
  0xd4   :  { %v934_v52 = vadd.f32 %v933_v51, %v921_v50  ;;  %v946_v53 = vpop.f32.mrf.mxu1 }
  0xd6   :  { %v947_v54 = vadd.f32 %v946_v53, %v934_v52 }
  0xdb   :  { %v959_v56 = vpop.f32.mrf.mxu2  ;;  %v935_v63 = vpop.f32.mrf.mxu0 }
  0xdc   :  { %v960_v58 = vadd.f32 %v959_v56, %v947_v54  ;;  %v972_v59 = vpop.f32.mrf.mxu3  ;;  %v948_v0 = vpop.f32.mrf.mxu1 }
  0xde   :  { %v973_v62 = vadd.f32 %v972_v59, %v960_v58 }
  0xe0   :  { %v1095_v1 = vadd.f32 %v1091_v60, %v973_v62 }
  0xe2   :  { %v1097_v3 = vmax.f32 %v1095_v1, 0.0 }
  0xe3   :  { %v961_v4 = vpop.f32.mrf.mxu2 }
  0xe4   :  { %v1099_v9 = vpack.c.bf16 %v1097_v3, %v1097_v3  ;;  %v974_v10 = vpop.f32.mrf.mxu3 }
  0xe6   :  { %1241 = vmatmul.bf16.vlgmr.msra.gmra.mxu0 %v1099_v9 }
  0xf3   :  { %v985_v13 = vpop.f32.mrf.mxu0 }
  0xf4   :  { %v998_v14 = vpop.f32.mrf.mxu1 }
  0xf5   :  { %v999_v24 = vadd.f32 %v998_v14, %v985_v13 }
  0xfb   :  { %v1011_v16 = vpop.f32.mrf.mxu2  ;;  %v987_v19 = vpop.f32.mrf.mxu0 }
  0xfc   :  { %v1024_v17 = vpop.f32.mrf.mxu3  ;;  %v1000_v20 = vpop.f32.mrf.mxu1  ;;  %v1012_v25 = vadd.f32 %v1011_v16, %v999_v24 }
  0xfe   :  { %v1025_v26 = vadd.f32 %v1024_v17, %v1012_v25 }
 0x103   :  { %v1013_v22 = vpop.f32.mrf.mxu2 }
 0x104   :  { %v1026_v23 = vpop.f32.mrf.mxu3 }
 0x113   :  { %v1037_v27 = vpop.f32.mrf.mxu0 }
 0x114   :  { %v1050_v28 = vpop.f32.mrf.mxu1  ;;  %v1038_v29 = vadd.f32 %v1037_v27, %v1025_v26 }
 0x116   :  { %v1051_v30 = vadd.f32 %v1050_v28, %v1038_v29 }
 0x11b   :  { %v1063_v32 = vpop.f32.mrf.mxu2  ;;  %v1039_v38 = vpop.f32.mrf.mxu0 }
 0x11c   :  { %v1064_v33 = vadd.f32 %v1063_v32, %v1051_v30  ;;  %v1076_v34 = vpop.f32.mrf.mxu3  ;;  %v1052_v39 = vpop.f32.mrf.mxu1 }
 0x11e   :  { %v1077_v57 = vadd.f32 %v1076_v34, %v1064_v33 }
 0x120   :  { %v1096_v41 = vadd.f32 %v1092_v37, %v1077_v57 }
 0x122   :  { %v1098_v42 = vmax.f32 %v1096_v41, 0.0 }
 0x123   :  { %v1065_v43 = vpop.f32.mrf.mxu2 }
 0x124   :  { %v1100_v44 = vpack.c.bf16 %v1098_v42, %v1098_v42  ;;  %v1078_v45 = vpop.f32.mrf.mxu3 }
 0x126   :  { %1254 = vmatmul.bf16.vlgmr.msra.gmra.mxu1 %v1100_v44 }
 0x163   :  { %v1242_v5 = vpop.f32.mrf.mxu0 }
 0x164   :  { %v1243_v6 = vadd.f32 %v2008_v40, %v1242_v5 }
 0x16b   :  { %v1244_v35 = vpop.f32.mrf.mxu0 }
 0x1a3   :  { %v1255_v31 = vpop.f32.mrf.mxu1 }
 0x1a4   :  { %v1256_v36 = vadd.f32 %v1255_v31, %v1243_v6 }
 0x1a6   :  { %1259 = vst [vmem:[#allocation11] sm:$0xff] %v1256_v36 }
 0x1a7   :  { %1270 = dma.vmem_to_hbm [thread:$0]  %s1266_s16, 128, %s1268_s19, [#allocation5]  }
 0x1ab   :  { %v1257_v46 = vpop.f32.mrf.mxu1 }
 0x1ac   :  { %2135 = dma.done.wait [#allocation5], 128  }
 0x1ad   :  { %2136 = vsyncadd [#allocation5], 4294967168 }
 0x1ae   :  { %1275 = vsyncpa [#allocation4], 1 }
 0x1af   :  { %1276 = vsyncpa [#allocation7], 1 }
 0x1b0   :  { %1277 = vsyncpa [#allocation10], 1 }
 0x1b1   :  { %1278 = vsyncpa [#allocation5], 1 }

</bundles_post_ra>
